<compile_context>
chip_gen: v7x
topology: tpu7x:2x2x1
jax: 0.10.0
libtpu: 0.0.40
codegen_flags: <defaults>
</compile_context>

<pallas_src>
import math
from functools import partial

import jax
import jax.numpy as jnp
from jax.experimental import pallas as pl
from jax.experimental.pallas import tpu as pltpu

# Preferred tile sizes (largest aligned divisor of the real dim is used).
DEF_TM = 256    # activation rows (M = B*T)
DEF_TN = 256    # output-column tile
DEF_TK = 512    # reduction tile for the attention out-projection
DEF_TH = 256    # hidden-dim chunk for the SwiGLU MLP (v7x-safe; 512 on v6e)
DEF_TQ = 128    # query positions per flash tile (per KV head, pre-fold)
DEF_TKV = 256   # kv positions per flash tile
DEF_TS = 256    # rows per tile of the K-RoPE kernel

_MASK = -1e30   # large-negative f32 used for causal masking (always f32)


def _fit_tile(dim, preferred, align):
    """Largest `align`-multiple divisor of `dim` <= `preferred` (full dim only
    when dim is already small or no aligned divisor exists)."""
    if dim <= preferred:
        return dim
    t = (preferred // align) * align
    while t >= align:
        if dim % t == 0:
            return t
        t -= align
    return dim


def _vmem_limit(block_bytes, scratch_bytes=0, extra_bytes=0):
    """Scoped-VMEM limit from the actual block footprint (double-buffered
    blocks + scratch + compiler temporaries), clamped to [32 MiB, 64 MiB] so
    it is valid on every TPU generation (v7x physical VMEM is 64 MiB)."""
    total = 2 * sum(block_bytes) + scratch_bytes + extra_bytes
    return int(min(64 << 20, max(32 << 20, int(total * 1.5))))


# ----------------------------- Pallas kernels -----------------------------

def _rmsnorm_matmul_kernel(x_ref, g_ref, w_ref, o_ref, xn_sc, *, eps):
    """out = rmsnorm(x) @ W (ln_1 fused into the QKV projection).

    rmsnorm(x) is computed once per row tile (j == 0) into a bf16 VMEM
    scratch and reused for every output-column tile."""
    @pl.when(pl.program_id(1) == 0)
    def _():
        x = x_ref[...].astype(jnp.float32)
        ms = jnp.mean(x * x, axis=-1, keepdims=True)
        xn_sc[...] = (x * jax.lax.rsqrt(ms + eps)
                      * g_ref[...].astype(jnp.float32)).astype(jnp.bfloat16)

    o_ref[...] = jnp.dot(
        xn_sc[...], w_ref[...], preferred_element_type=jnp.float32
    ).astype(o_ref.dtype)


def _rope_k_kernel(k_ref, c_ref, s_ref, o_ref):
    """Half-split RoPE applied once per K token (hoisted out of the kv loop).
    Weights were pre-permuted to the half-split basis, so the rotation is a
    plain rotate-half (slice + concat)."""
    k = k_ref[...].astype(jnp.float32)
    c = c_ref[...].astype(jnp.float32)
    s = s_ref[...].astype(jnp.float32)
    half = k.shape[-1] // 2
    rot = jnp.concatenate([-k[:, half:], k[:, :half]], axis=-1)
    o_ref[...] = (k * c + rot * s).astype(o_ref.dtype)


def _flash_attn_kernel(q_ref, k_ref, v_ref, cq_ref, sq_ref, o_ref,
                       qrot_sc, m_sc, l_sc, acc_sc,
                       *, scale, tq, tkv, n_rep, hd):
    """Flash-style causal GQA attention (prefill) with in-kernel Q RoPE.

    Blocks are read/written directly in the 2-D (B*T, channels) layouts:
      q_ref: (tq, n_rep*hd)  -- the n_rep heads of one KV group (lane slices)
      k_ref: (tkv, hd)       -- pre-rotated K for the group
      v_ref: (tkv, hd)
      o_ref: (tq, n_rep*hd)  -- written in the layout c_proj consumes
    The kv axis (program_id 3) is the online-softmax reduction; Q is rotated
    & pre-scaled once per q block (ki == 0)."""
    qi = pl.program_id(2)
    ki = pl.program_id(3)
    half = hd // 2

    @pl.when(ki == 0)
    def _():
        c = cq_ref[...].astype(jnp.float32)
        sn = sq_ref[...].astype(jnp.float32)
        for r in range(n_rep):
            q = q_ref[:, r * hd:(r + 1) * hd].astype(jnp.float32)
            rot = jnp.concatenate([-q[:, half:], q[:, :half]], axis=-1)
            qrot_sc[r] = ((q * c + rot * sn) * scale).astype(jnp.bfloat16)
            m_sc[r] = jnp.full((tq, 1), -jnp.inf, dtype=jnp.float32)
            l_sc[r] = jnp.zeros((tq, 1), dtype=jnp.float32)
            acc_sc[r] = jnp.zeros((tq, hd), dtype=jnp.float32)

    kv_start = ki * tkv
    q_hi = (qi + 1) * tq - 1

    @pl.when(kv_start <= q_hi)          # skip compute on fully-masked tiles
    def _():
        k = k_ref[...]                   # bf16, already rotated
        v = v_ref[...]
        qpos = qi * tq + jax.lax.broadcasted_iota(jnp.int32, (tq, tkv), 0)
        kpos = kv_start + jax.lax.broadcasted_iota(jnp.int32, (tq, tkv), 1)
        mask = kpos <= qpos              # shared by all reps of the group
        for r in range(n_rep):
            s = jax.lax.dot_general(
                qrot_sc[r], k, (((1,), (1,)), ((), ())),
                preferred_element_type=jnp.float32)          # (tq, tkv)
            s = jnp.where(mask, s, _MASK)
            m_prev = m_sc[r]
            m_new = jnp.maximum(m_prev, jnp.max(s, axis=-1, keepdims=True))
            alpha = jnp.exp(m_prev - m_new)
            p = jnp.exp(s - m_new)
            l_sc[r] = alpha * l_sc[r] + jnp.sum(p, axis=-1, keepdims=True)
            acc_sc[r] = alpha * acc_sc[r] + jax.lax.dot_general(
                p.astype(jnp.bfloat16), v, (((1,), (0,)), ((), ())),
                preferred_element_type=jnp.float32)
            m_sc[r] = m_new

    @pl.when(ki == pl.num_programs(3) - 1)
    def _():
        for r in range(n_rep):
            # approx reciprocal is fine for inference; use approx=False if
            # this path is reused for training / logit-sensitive eval.
            o_ref[:, r * hd:(r + 1) * hd] = (
                acc_sc[r] * pl.reciprocal(l_sc[r], approx=True)
            ).astype(o_ref.dtype)


def _matmul_resid_kernel(x_ref, w_ref, r_ref, o_ref, acc_ref):
    """out = resid + x @ W, K-tiled with an f32 VMEM accumulator."""
    @pl.when(pl.program_id(2) == 0)
    def _():
        acc_ref[...] = jnp.zeros_like(acc_ref)

    acc_ref[...] += jnp.dot(x_ref[...], w_ref[...],
                            preferred_element_type=jnp.float32)

    @pl.when(pl.program_id(2) == pl.num_programs(2) - 1)
    def _():
        o_ref[...] = (acc_ref[...] + r_ref[...].astype(jnp.float32)
                      ).astype(o_ref.dtype)


def _rmsnorm_mlp_kernel(x_ref, g_ref, wfc_ref, wfc2_ref, wproj_ref, o_ref,
                        xn_sc, acc_sc, *, eps):
    """out = x + (silu(xn @ Wfc2) * (xn @ Wfc)) @ Wproj, xn = rmsnorm(x).

    Hidden dimension is chunked along grid axis 1 and accumulated into an f32
    VMEM scratch; rmsnorm(x) is computed once (h == 0) into a bf16 scratch."""
    h = pl.program_id(1)

    @pl.when(h == 0)
    def _():
        x = x_ref[...].astype(jnp.float32)
        ms = jnp.mean(x * x, axis=-1, keepdims=True)
        xn_sc[...] = (x * jax.lax.rsqrt(ms + eps)
                      * g_ref[...].astype(jnp.float32)).astype(jnp.bfloat16)
        acc_sc[...] = jnp.zeros_like(acc_sc)

    xn = xn_sc[...]
    g = jnp.dot(xn, wfc2_ref[...], preferred_element_type=jnp.float32)
    u = jnp.dot(xn, wfc_ref[...], preferred_element_type=jnp.float32)
    hact = (g * jax.nn.sigmoid(g) * u).astype(jnp.bfloat16)
    acc_sc[...] += jnp.dot(hact, wproj_ref[...],
                           preferred_element_type=jnp.float32)

    @pl.when(h == pl.num_programs(1) - 1)
    def _():
        o_ref[...] = (acc_sc[...] + x_ref[...].astype(jnp.float32)
                      ).astype(o_ref.dtype)


# ------------------------------ call wrappers ------------------------------

def rmsnorm_matmul(x2d, gamma, w_t, eps):
    M, C = x2d.shape
    N = w_t.shape[1]
    tm = _fit_tile(M, DEF_TM, 8)
    tn = _fit_tile(N, DEF_TN, 128)
    blocks = [tm * C * 2, C * 4, C * tn * 2, tm * tn * 2]
    return pl.pallas_call(
        partial(_rmsnorm_matmul_kernel, eps=eps),
        out_shape=jax.ShapeDtypeStruct((M, N), jnp.bfloat16),
        grid=(M // tm, N // tn),
        in_specs=[
            pl.BlockSpec((tm, C), lambda i, j: (i, 0)),
            pl.BlockSpec((1, C), lambda i, j: (0, 0)),
            pl.BlockSpec((C, tn), lambda i, j: (0, j)),
        ],
        out_specs=pl.BlockSpec((tm, tn), lambda i, j: (i, j)),
        scratch_shapes=[pltpu.VMEM((tm, C), jnp.bfloat16)],
        compiler_params=pltpu.CompilerParams(
            # j must be "arbitrary": the xn scratch carries state across j.
            dimension_semantics=("parallel", "arbitrary"),
            vmem_limit_bytes=_vmem_limit(blocks, scratch_bytes=tm * C * 2,
                                         extra_bytes=tm * C * 4)),
    )(x2d, gamma, w_t)


def rope_rotate_k(qkv2d, cos, sin, *, B, T, n_head, n_kv_head, hd):
    """Rotate the K columns of the 2-D QKV output once (per token, per head)."""
    ts = _fit_tile(T, DEF_TS, 8)
    srows = T // ts
    blocks = [ts * hd * 2] * 4
    return pl.pallas_call(
        _rope_k_kernel,
        out_shape=jax.ShapeDtypeStruct((B * T, n_kv_head * hd), jnp.bfloat16),
        grid=(B, n_kv_head, srows),
        in_specs=[
            pl.BlockSpec((ts, hd), lambda b, g, si: (b * srows + si,
                                                     n_head + g)),
            pl.BlockSpec((ts, hd), lambda b, g, si: (si, 0)),
            pl.BlockSpec((ts, hd), lambda b, g, si: (si, 0)),
        ],
        out_specs=pl.BlockSpec((ts, hd), lambda b, g, si: (b * srows + si, g)),
        compiler_params=pltpu.CompilerParams(
            dimension_semantics=("parallel", "parallel", "parallel"),
            vmem_limit_bytes=_vmem_limit(blocks, extra_bytes=ts * hd * 16)),
    )(qkv2d, cos, sin)


def flash_attention(qkv2d, krot2d, cos, sin, *, B, T, n_head, n_kv_head, hd,
                    scale):
    """Causal GQA flash attention reading Q/V from the 2-D QKV output, K from
    the 2-D pre-rotated K buffer, writing the output in (B*T, C) layout."""
    n_rep = n_head // n_kv_head
    C = n_head * hd
    tq = _fit_tile(T, DEF_TQ, 8)
    tkv = _fit_tile(T, DEF_TKV, 8)
    qrows, krows = T // tq, T // tkv

    def q_map(b, g, qi, ki):
        return (b * qrows + qi, g)

    def cs_map(b, g, qi, ki):
        return (qi, 0)

    def k_map(b, g, qi, ki):
        # Clamp to the causal bound so fully-masked steps repeat the previous
        # block index and the pipeline elides the K fetch.
        kmax = ((qi + 1) * tq - 1) // tkv
        return (b * krows + jnp.minimum(ki, kmax), g)

    def v_map(b, g, qi, ki):
        kmax = ((qi + 1) * tq - 1) // tkv
        return (b * krows + jnp.minimum(ki, kmax), n_head + n_kv_head + g)

    def o_map(b, g, qi, ki):
        return (b * qrows + qi, g)

    blocks = [tq * n_rep * hd * 2, tkv * hd * 2, tkv * hd * 2,
              tq * hd * 2, tq * hd * 2, tq * n_rep * hd * 2]
    scratch = n_rep * tq * (hd * 6 + 8)
    # TODO(synk): a PrefetchScalarGridSpec schedule enumerating only
    # lower-triangular (qi, ki) tiles would also halve the grid-step count.
    return pl.pallas_call(
        partial(_flash_attn_kernel, scale=scale, tq=tq, tkv=tkv,
                n_rep=n_rep, hd=hd),
        out_shape=jax.ShapeDtypeStruct((B * T, C), jnp.bfloat16),
        grid=(B, n_kv_head, qrows, krows),
        in_specs=[
            pl.BlockSpec((tq, n_rep * hd), q_map),
            pl.BlockSpec((tkv, hd), k_map),
            pl.BlockSpec((tkv, hd), v_map),
            pl.BlockSpec((tq, hd), cs_map),
            pl.BlockSpec((tq, hd), cs_map),
        ],
        out_specs=pl.BlockSpec((tq, n_rep * hd), o_map),
        scratch_shapes=[
            pltpu.VMEM((n_rep, tq, hd), jnp.bfloat16),   # rotated+scaled Q
            pltpu.VMEM((n_rep, tq, 1), jnp.float32),     # m
            pltpu.VMEM((n_rep, tq, 1), jnp.float32),     # l
            pltpu.VMEM((n_rep, tq, hd), jnp.float32),    # acc
        ],
        compiler_params=pltpu.CompilerParams(
            dimension_semantics=("parallel", "parallel", "parallel",
                                 "arbitrary"),
            vmem_limit_bytes=_vmem_limit(blocks, scratch_bytes=scratch,
                                         extra_bytes=tq * tkv * 16)),
    )(qkv2d, krot2d, qkv2d, cos, sin)


def matmul_residual(x2d, w_t, resid2d):
    M, K = x2d.shape
    N = w_t.shape[1]
    tm = _fit_tile(M, DEF_TM, 8)
    tn = _fit_tile(N, DEF_TN, 128)
    tk = _fit_tile(K, DEF_TK, 128)
    blocks = [tm * tk * 2, tk * tn * 2, tm * tn * 2, tm * tn * 2]
    return pl.pallas_call(
        _matmul_resid_kernel,
        out_shape=jax.ShapeDtypeStruct((M, N), resid2d.dtype),
        grid=(M // tm, N // tn, K // tk),
        in_specs=[
            pl.BlockSpec((tm, tk), lambda i, j, k: (i, k)),
            pl.BlockSpec((tk, tn), lambda i, j, k: (k, j)),
            pl.BlockSpec((tm, tn), lambda i, j, k: (i, j)),
        ],
        out_specs=pl.BlockSpec((tm, tn), lambda i, j, k: (i, j)),
        scratch_shapes=[pltpu.VMEM((tm, tn), jnp.float32)],
        compiler_params=pltpu.CompilerParams(
            dimension_semantics=("parallel", "parallel", "arbitrary"),
            vmem_limit_bytes=_vmem_limit(blocks, scratch_bytes=tm * tn * 4)),
    )(x2d, w_t, resid2d)


def rmsnorm_mlp_residual(x2d, gamma, wfc_t, wfc2_t, wproj_t, eps):
    M, C = x2d.shape
    H = wfc_t.shape[1]
    tm = _fit_tile(M, DEF_TM, 8)
    th = _fit_tile(H, DEF_TH, 128)
    blocks = [tm * C * 2, C * 4, C * th * 2, C * th * 2, th * C * 2,
              tm * C * 2]
    scratch = tm * C * (2 + 4)
    return pl.pallas_call(
        partial(_rmsnorm_mlp_kernel, eps=eps),
        out_shape=jax.ShapeDtypeStruct((M, C), x2d.dtype),
        grid=(M // tm, H // th),
        in_specs=[
            pl.BlockSpec((tm, C), lambda i, h: (i, 0)),
            pl.BlockSpec((1, C), lambda i, h: (0, 0)),
            pl.BlockSpec((C, th), lambda i, h: (0, h)),
            pl.BlockSpec((C, th), lambda i, h: (0, h)),
            pl.BlockSpec((th, C), lambda i, h: (h, 0)),
        ],
        out_specs=pl.BlockSpec((tm, C), lambda i, h: (i, 0)),
        scratch_shapes=[pltpu.VMEM((tm, C), jnp.bfloat16),
                        pltpu.VMEM((tm, C), jnp.float32)],
        compiler_params=pltpu.CompilerParams(
            dimension_semantics=("parallel", "arbitrary"),
            vmem_limit_bytes=_vmem_limit(blocks, scratch_bytes=scratch,
                                         extra_bytes=tm * th * 12)),
    )(x2d, gamma, wfc_t, wfc2_t, wproj_t)


# ------------------------------ RoPE tables --------------------------------

def _apply_rope_scaling(freqs):
    scale_factor = 8.0
    low_freq_factor = 1.0
    high_freq_factor = 4.0
    old_context_len = 8192.0
    low_freq_wavelen = old_context_len / low_freq_factor
    high_freq_wavelen = old_context_len / high_freq_factor
    wavelen = 2.0 * math.pi / freqs
    smooth = (old_context_len / wavelen - low_freq_factor) / (
        high_freq_factor - low_freq_factor)
    scaled = (1.0 - smooth) * freqs / scale_factor + smooth * freqs
    return jnp.where(wavelen < high_freq_wavelen, freqs,
                     jnp.where(wavelen > low_freq_wavelen,
                               freqs / scale_factor, scaled))


def precompute_rope(hd, T, start_pos, theta, use_scaled):
    inv = 1.0 / (theta ** (jnp.arange(0, hd, 2, dtype=jnp.float32) / hd))
    if use_scaled:
        inv = _apply_rope_scaling(inv)
    pos = jnp.arange(start_pos, start_pos + T, dtype=jnp.float32)
    ang = pos[:, None] * inv[None, :]                       # (T, hd // 2)
    return jnp.cos(ang), jnp.sin(ang)


# ------------------------------ Block forward ------------------------------

def block_forward(kp, x, start_pos=0):
    B, T, C = x.shape
    n_head, n_kv_head, hd = kp["n_head"], kp["n_kv_head"], kp["hd"]
    n_rep = n_head // n_kv_head
    assert start_pos == 0, "prefill-only path"
    # TODO(synk): KV-cache write/read and the start_pos>0 / T==1 decode path
    # (flash_attention_decode) are not implemented; prefill only.
    assert hd % 128 == 0, "head_dim must be a multiple of the 128-lane width"
    assert T % 8 == 0, "sequence length must be a multiple of 8"

    x2 = x.reshape(B * T, C).astype(jnp.bfloat16)           # bf16 residual

    # ---- x = x + proj(attn(rope(qkv(ln_1(x))))) ----
    qkv = rmsnorm_matmul(x2, kp["ln1_w"], kp["wqkv_t"], kp["eps"])

    cos, sin = precompute_rope(hd, T, start_pos, kp["rope_theta"],
                               kp["use_scaled_rope"])
    # half-split layout (weights were pre-permuted accordingly), bf16 tables
    cos_hs = jnp.concatenate([cos, cos], axis=-1).astype(jnp.bfloat16)
    sin_hs = jnp.concatenate([sin, sin], axis=-1).astype(jnp.bfloat16)

    k_rot = rope_rotate_k(qkv, cos_hs, sin_hs, B=B, T=T, n_head=n_head,
                          n_kv_head=n_kv_head, hd=hd)
    y2 = flash_attention(qkv, k_rot, cos_hs, sin_hs, B=B, T=T, n_head=n_head,
                         n_kv_head=n_kv_head, hd=hd,
                         scale=1.0 / math.sqrt(hd))
    x2 = matmul_residual(y2, kp["wproj_t"], x2)              # residual fused

    # ---- x = x + mlp(ln_2(x)) : single fused kernel ----
    out2 = rmsnorm_mlp_residual(x2, kp["ln2_w"], kp["wfc_t"], kp["wfc2_t"],
                                kp["wproj_mlp_t"], kp["eps"])
    return out2.reshape(B, T, C)


# ------------------------------- parameters --------------------------------

def init_params(key, n_embd, n_head, n_kv_head, hidden_dim, norm_eps,
                rope_theta=500000.0, use_scaled_rope=True):
    hd = n_embd // n_head
    ks = jax.random.split(key, 7)
    std = 0.02
    return {
        "n_head": n_head, "n_kv_head": n_kv_head, "hd": hd, "eps": norm_eps,
        "rope_theta": rope_theta, "use_scaled_rope": use_scaled_rope,
        "ln1_w": 1.0 + 0.1 * jax.random.normal(ks[5], (n_embd,), jnp.float32),
        "ln2_w": 1.0 + 0.1 * jax.random.normal(ks[6], (n_embd,), jnp.float32),
        "attn_wqkv": std * jax.random.normal(
            ks[0], ((n_head + 2 * n_kv_head) * hd, n_embd), jnp.float32),
        "attn_wproj": std * jax.random.normal(ks[1], (n_embd, n_embd),
                                              jnp.float32),
        "mlp_wfc": std * jax.random.normal(ks[2], (hidden_dim, n_embd),
                                           jnp.float32),
        "mlp_wfc2": std * jax.random.normal(ks[3], (hidden_dim, n_embd),
                                            jnp.float32),
        "mlp_wproj": std * jax.random.normal(ks[4], (n_embd, hidden_dim),
                                             jnp.float32),
    }


def _interleaved_to_halfsplit_rows(w, n_heads, hd):
    """Reorder the per-head output rows from the interleaved RoPE basis
    (even/odd pairs) to the half-split basis [all even dims, all odd dims].
    Applied to Q and K only; scores are invariant, so the module output is
    bit-for-bit the same math while the in-kernel rotation becomes a simple
    rotate-half."""
    perm = jnp.concatenate([jnp.arange(0, hd, 2), jnp.arange(1, hd, 2)])
    return w.reshape(n_heads, hd, -1)[:, perm, :].reshape(n_heads * hd, -1)


def prepare_kernel_params(p):
    """One-time weight prep: Q/K half-split permutation, (out,in)->(in,out)
    transpose and bf16 cast, so nothing is re-done per forward pass."""
    n_head, n_kv_head, hd = p["n_head"], p["n_kv_head"], p["hd"]
    nq, nk = n_head * hd, n_kv_head * hd
    wqkv = p["attn_wqkv"]
    wq = _interleaved_to_halfsplit_rows(wqkv[:nq], n_head, hd)
    wk = _interleaved_to_halfsplit_rows(wqkv[nq:nq + nk], n_kv_head, hd)
    wv = wqkv[nq + nk:]
    wqkv_hs = jnp.concatenate([wq, wk, wv], axis=0)
    return dict(
        n_head=n_head, n_kv_head=n_kv_head, hd=hd,
        eps=p["eps"], rope_theta=p["rope_theta"],
        use_scaled_rope=p["use_scaled_rope"],
        ln1_w=p["ln1_w"].reshape(1, -1).astype(jnp.float32),
        ln2_w=p["ln2_w"].reshape(1, -1).astype(jnp.float32),
        wqkv_t=wqkv_hs.T.astype(jnp.bfloat16),
        wproj_t=p["attn_wproj"].T.astype(jnp.bfloat16),
        wfc_t=p["mlp_wfc"].T.astype(jnp.bfloat16),
        wfc2_t=p["mlp_wfc2"].T.astype(jnp.bfloat16),
        wproj_mlp_t=p["mlp_wproj"].T.astype(jnp.bfloat16),
    )


# --------------------------- pure-JAX reference ----------------------------

def _rms_ref(x, w, eps):
    ms = jnp.mean(x * x, axis=-1, keepdims=True)
    return x * jax.lax.rsqrt(ms + eps) * w


def _rope_ref(x, cos, sin):
    xe, xo = x[..., 0::2], x[..., 1::2]
    c, s = cos[None, :, None, :], sin[None, :, None, :]
    oe = xe * c - xo * s
    oo = xe * s + xo * c
    return jnp.stack([oe, oo], axis=-1).reshape(x.shape)


def reference_forward(p, x, start_pos=0):
    B, T, C = x.shape
    n_head, n_kv_head, hd = p["n_head"], p["n_kv_head"], p["hd"]
    n_rep = n_head // n_kv_head

    h = _rms_ref(x, p["ln1_w"], p["eps"])
    qkv = h @ p["attn_wqkv"].T
    q = qkv[..., : n_head * hd].reshape(B, T, n_head, hd)
    k = qkv[..., n_head * hd:(n_head + n_kv_head) * hd].reshape(
        B, T, n_kv_head, hd)
    v = qkv[..., (n_head + n_kv_head) * hd:].reshape(B, T, n_kv_head, hd)
    cos, sin = precompute_rope(hd, T, start_pos, p["rope_theta"],
                               p["use_scaled_rope"])
    q, k = _rope_ref(q, cos, sin), _rope_ref(k, cos, sin)
    qh, kh, vh = (t.transpose(0, 2, 1, 3) for t in (q, k, v))
    kh = jnp.repeat(kh, n_rep, axis=1)
    vh = jnp.repeat(vh, n_rep, axis=1)
    s = jnp.einsum("bhtd,bhsd->bhts", qh, kh) / math.sqrt(hd)
    mask = jnp.tril(jnp.ones((T, T), bool))
    s = jnp.where(mask[None, None], s, _MASK)
    pattn = jax.nn.softmax(s, axis=-1)
    y = jnp.einsum("bhts,bhsd->bhtd", pattn, vh)
    y = y.transpose(0, 2, 1, 3).reshape(B, T, C)
    x = x + y @ p["attn_wproj"].T

    h2 = _rms_ref(x, p["ln2_w"], p["eps"])
    g = h2 @ p["mlp_wfc2"].T
    u = h2 @ p["mlp_wfc"].T
    return x + ((g * jax.nn.sigmoid(g)) * u) @ p["mlp_wproj"].T


# ---------------------------------- main -----------------------------------

if __name__ == "__main__":
    key = jax.random.PRNGKey(0)
    pkey, xkey = jax.random.split(key)

    # Small shapes consistent with the module (Llama head_dim = 128).
    B, T = 2, 16
    n_embd, n_head, n_kv_head, hidden_dim = 512, 4, 2, 1024
    params = init_params(pkey, n_embd, n_head, n_kv_head, hidden_dim,
                         norm_eps=1e-5)
    kparams = prepare_kernel_params(params)

    x = jax.random.normal(xkey, (B, T, n_embd), jnp.float32)

    out = block_forward(kparams, x, start_pos=0)
    out = jax.block_until_ready(out)

    ref = reference_forward(params, x, start_pos=0)
    assert out.shape == (B, T, n_embd)
    max_err = float(jnp.max(jnp.abs(out.astype(jnp.float32) - ref)))
    # bf16 residual stream / weights / MXU inputs (f32 accumulation) vs the
    # f32 reference.
    assert max_err < 5e-2, f"mismatch vs reference, max abs err = {max_err}"

    print("KERNEL_OK")
</pallas_src>

<mosaic_0001>
module attributes {stable_mosaic.version = 11 : i64} {
  func.func @_rmsnorm_matmul_kernel(%arg0: i32, %arg1: i32, %arg2: memref<32x512xbf16, #tpu.memory_space<vmem>>, %arg3: memref<1x512xf32, #tpu.memory_space<vmem>>, %arg4: memref<512x256xbf16, #tpu.memory_space<vmem>>, %arg5: memref<32x256xbf16, #tpu.memory_space<vmem>>, %arg6: memref<32x512xbf16, #tpu.memory_space<vmem>>) attributes {dimension_semantics = [#tpu.dimension_semantics<parallel>, #tpu.dimension_semantics<arbitrary>], iteration_bounds = array<i64: 1, 4>, scalar_prefetch = 0 : i64, scratch_operands = 1 : i64, tpu.core_type = #tpu.core_type<tc>, window_params = [{transform_indices = @transform_0, window_bounds = array<i64: 32, 512>}, {pipeline_mode = #tpu.pipeline_mode<synchronous>, transform_indices = @transform_1, window_bounds = array<i64: 1, 512>}, {transform_indices = @transform_2, window_bounds = array<i64: 512, 256>}, {transform_indices = @transform_3, window_bounds = array<i64: 32, 256>}]} {
    %c0_i32 = arith.constant 0 : i32
    %0 = arith.cmpi eq, %arg1, %c0_i32 : i32
    %1 = arith.extui %0 : i1 to i32
    %c0_i32_0 = arith.constant 0 : i32
    %2 = arith.cmpi ne, %1, %c0_i32_0 : i32
    scf.if %2 {
      %c0_6 = arith.constant 0 : index
      %c0_7 = arith.constant 0 : index
      %8 = vector.load %arg2[%c0_6, %c0_7] : memref<32x512xbf16, #tpu.memory_space<vmem>>, vector<32x512xbf16>
      %9 = arith.extf %8 : vector<32x512xbf16> to vector<32x512xf32>
      %10 = arith.mulf %9, %9 : vector<32x512xf32>
      %cst_8 = arith.constant dense<0.000000e+00> : vector<32xf32>
      %11 = vector.multi_reduction <add>, %10, %cst_8 [1] : vector<32x512xf32> to vector<32xf32>
      %12 = vector.shape_cast %11 : vector<32xf32> to vector<32x1xf32>
      %cst_9 = arith.constant 5.120000e+02 : f32
      %13 = vector.broadcast %cst_9 : f32 to vector<32x1xf32>
      %14 = arith.divf %12, %13 : vector<32x1xf32>
      %cst_10 = arith.constant 9.99999974E-6 : f32
      %15 = vector.broadcast %cst_10 : f32 to vector<32x1xf32>
      %16 = arith.addf %14, %15 : vector<32x1xf32>
      %17 = math.rsqrt %16 : vector<32x1xf32>
      %18 = vector.broadcast %17 : vector<32x1xf32> to vector<32x512xf32>
      %19 = arith.mulf %9, %18 : vector<32x512xf32>
      %c0_11 = arith.constant 0 : index
      %c0_12 = arith.constant 0 : index
      %20 = vector.load %arg3[%c0_11, %c0_12] : memref<1x512xf32, #tpu.memory_space<vmem>>, vector<1x512xf32>
      %21 = vector.broadcast %20 : vector<1x512xf32> to vector<32x512xf32>
      %22 = arith.mulf %19, %21 : vector<32x512xf32>
      %23 = arith.truncf %22 : vector<32x512xf32> to vector<32x512xbf16>
      %c0_13 = arith.constant 0 : index
      %c0_14 = arith.constant 0 : index
      %24 = vector.load %arg6[%c0_13, %c0_14] : memref<32x512xbf16, #tpu.memory_space<vmem>>, vector<32x512xbf16>
      tpu.vector_store %arg6[%c0_13, %c0_14], %23 {strides = array<i32>} : memref<32x512xbf16, #tpu.memory_space<vmem>>, vector<32x512xbf16>,
    } else {
    }
    %c0 = arith.constant 0 : index
    %c0_1 = arith.constant 0 : index
    %3 = vector.load %arg6[%c0, %c0_1] : memref<32x512xbf16, #tpu.memory_space<vmem>>, vector<32x512xbf16>
    %c0_2 = arith.constant 0 : index
    %c0_3 = arith.constant 0 : index
    %4 = vector.load %arg4[%c0_2, %c0_3] : memref<512x256xbf16, #tpu.memory_space<vmem>>, vector<512x256xbf16>
    %cst = arith.constant dense<0.000000e+00> : vector<32x256xf32>
    %5 = tpu.matmul %3, %4, %cst {dimension_numbers = #tpu.dot_dimension_numbers<[1], [0], [0], [1], [0, 0, 1, 1], [], []>} : vector<32x512xbf16>, vector<512x256xbf16>, vector<32x256xf32> -> vector<32x256xf32>
    %6 = arith.truncf %5 : vector<32x256xf32> to vector<32x256xbf16>
    %c0_4 = arith.constant 0 : index
    %c0_5 = arith.constant 0 : index
    %7 = vector.load %arg5[%c0_4, %c0_5] : memref<32x256xbf16, #tpu.memory_space<vmem>>, vector<32x256xbf16>
    tpu.vector_store %arg5[%c0_4, %c0_5], %6 {strides = array<i32>} : memref<32x256xbf16, #tpu.memory_space<vmem>>, vector<32x256xbf16>,
    return
  }
  func.func @transform_0(%arg0: i32, %arg1: i32) -> (i32, i32) {
    %c0_i32 = arith.constant 0 : i32
    %c0_i32_0 = arith.constant 0 : i32
    return %arg0, %c0_i32 : i32, i32
  }
  func.func @transform_1(%arg0: i32, %arg1: i32) -> (i32, i32) {
    %c0_i32 = arith.constant 0 : i32
    %c0_i32_0 = arith.constant 0 : i32
    %c0_i32_1 = arith.constant 0 : i32
    return %c0_i32, %c0_i32_0 : i32, i32
  }
  func.func @transform_2(%arg0: i32, %arg1: i32) -> (i32, i32) {
    %c0_i32 = arith.constant 0 : i32
    %c0_i32_0 = arith.constant 0 : i32
    return %c0_i32, %arg1 : i32, i32
  }
  func.func @transform_3(%arg0: i32, %arg1: i32) -> (i32, i32) {
    %c0_i32 = arith.constant 0 : i32
    return %arg0, %arg1 : i32, i32
  }
}

</mosaic_0001>

<bundles_post_ra>
// kernel: tpu_custom_call.1
= control target key start
LH: loop header
LB: loop body
LE: loop exit
PB: predicated region body
PF: predicated region fallthrough
CT: control target
= control target key end

     0   :  { %8 = vsyncpa [#allocation4], 0  ;;  %s1956_s0 = inlined_call_operand.hbm [shape: bf16[32,512], index: 0, kind: input, shape index: {}]   ;;  %s1957_s1 = inlined_call_operand.hbm [shape: f32[1,512], index: 1, kind: input, shape index: {}]   ;;  %s1958_s2 = inlined_call_operand.hbm [shape: bf16[512,1024], index: 2, kind: input, shape index: {}]   ;;  %s1959_s3 = inlined_call_operand.hbm [shape: bf16[32,1024], index: 3, kind: output, shape index: {}]  }
   0x1   :  { %9 = vsyncpa [#allocation7], 0 }
   0x2   :  { %10 = vsyncpa [#allocation5], 0 }
   0x3   :  { %12 = vsyncpa [#allocation5 + $0x1], 0  ;;  %s1543_s12 = smov 0   ;;  %s1545_s13 = smov 0  }
   0x4   :  { %s1547_s14 = smov 0   ;;  %s1549_s15 = smov 0  }
   0x5   :  { %s1551_s16 = smov 0   ;;  %s1553_s17 = smov 0  }
   0x6 LB: > { %s1574_s18 = sadd.s32 4294967295, %s1509_s17   ;;  %s1037_s19 = sadd.s32 4294967294, %s1509_s17   ;;  %s1509_s17 = sphi %s1553_s17, %s18_s17   ;;  %s1505_s16 = sphi %s1551_s16, %s1981_s16   ;;  %s1501_s15 = sphi %s1549_s15, %s1980_s15   ;;  %s1497_s14 = sphi %s1547_s14, %s1979_s14   ;;  %s1493_s13 = sphi %s1545_s13, %s1978_s13   ;;  %s1489_s12 = sphi %s1543_s12, %s1977_s12  }
   0x7   : > { %s84_s20 = sadd.s32 1, %s1497_s14  ;;  %p91_p0 = scmp.ne.s32.totalorder %s1497_s14, %s1493_s13 }
   0x8   : > { %p92_p1 = scmp.eq.s32.totalorder %s1509_s17, 0  ;;  %p97_p2 = scmp.ne.s32.totalorder %s1493_s13, %s1489_s12 }
   0x9   : > { %p1960_p3 = scmp.eq.s32.totalorder %s1574_s18, 0  ;;  %p123_p4 = scmp.eq.s32.totalorder %s1574_s18, 3 }
   0xa   : > { %p1585_p5 = por %p92_p1, %p91_p0  ;;  %p129_p6 = scmp.eq.s32.totalorder %s1037_s19, 3 }
   0xb   : > { %p1591_p7 = por %p1960_p3, %p97_p2  ;;  %p1595_p8 = por %p123_p4, %p91_p0 }
   0xc   : > { %p1599_p9 = por %p129_p6, %p97_p2  ;;  %p1038_p10 = scmp.ge.s32.totalorder %s1509_s17, 1 }
   0xd   : > { %s1964_s22 = scalar_select %p1591_p7, 1, 0 }
   0xe   : > { %s1965_s23 = scalar_select %p1595_p8, 1, 0 }
   0xf   : > { %s1966_s24 = scalar_select %p1599_p9, 1, 0 }
  0x10   : > { %p136_p11 = scmp.lt.s32.totalorder %s1509_s17, 5  ;;  %s1511_s26 = smov [#allocation3]  }
  0x11   : > { %s152_s27 = sshll.u32 %s1511_s26, 4  ;;  %p1167_p0 = scmp.lt.s32.totalorder %s1509_s17, 4  ;;  %s1609_s27 = int_to_ptr.vmem [resolvable:$true] %s152_s27 }
  0x12   : > { %p1605_p12 = pnand %p1038_p10, %p136_p11  ;;  %s1512_s29 = smov [#allocation6]  }
  0x13   : > { %s166_s30 = sshll.u32 %s1512_s29, 4  ;;  %p1622_p2 = pnand %p1167_p0, %p1585_p5  ;;  %s1626_s30 = int_to_ptr.vmem [resolvable:$true] %s166_s30 }
  0x14   : > { %p1150_p13 = pneg %p1605_p12  ;;  %s1333_s7 = scalar_lea.hbm %s1956_s0, 1024 }
  0x15   : > { %p1334_p4 = scmp.ne.s32.totalorder %s1956_s0, %s1333_s7  ;;  %p1340_p5 = scmp.lt.u32.totalorder %s1333_s7, %s1956_s0 }
  0x16   : > { %p1616_p1 = pnand %p1150_p13, %p1960_p3 }
  0x18   : > { %p1335_p6 = pneg %p1616_p1 }
  0x1a   : > { %p1336_p10 = pnand %p1335_p6, %p1334_p4 }
  0x1c   : > { %p1337_p11 = pneg %p1336_p10 }
  0x1e   : > { %p1342_p13 = pnand %p1340_p5, %p1337_p11 }
  0x20   : > { %1345 = shalt.err (!%p1342_p13)
}
  0x21   : > { %s1346_s19 = scalar_lea.vmem %s1609_s27, 1024  ;;  %p1354_p8 = scmp.lt.s32.totalorder %s1609_s27, %s1609_s27 }
  0x22   : > { %p1347_p0 = scmp.ne.s32.totalorder %s1609_s27, %s1346_s19  ;;  %p1355_p4 = scmp.lt.s32.totalorder %s1346_s19, %s1346_s19 }
  0x24   : > { %p1349_p3 = pnand %p1347_p0, %p1335_p6  ;;  %p1356_p10 = por %p1355_p4, %p1354_p8 }
  0x26   : > { %p1350_p9 = pneg %p1349_p3 }
  0x28   : > { %p1357_p7 = pnand %p1356_p10, %p1350_p9 }
  0x2a   : > { %1360 = shalt.err (!%p1357_p7)
}
  0x2b   : > { %s1513_s21 = smov 256   ;;  %s1514_s26 = smov 16  }
  0x2c   : > { %1153 = dma.hbm_to_vmem [thread:$0]  (!%p1616_p1), %s1956_s0, 1024, %s1609_s27, [#allocation4], %s1513_s21, %s1513_s21, %s1514_s26  }
  0x2d   : > { %s1361_s8 = scalar_lea.hbm %s1957_s1, 64 }
  0x2e   : > { %p1362_p3 = scmp.ne.s32.totalorder %s1957_s1, %s1361_s8  ;;  %p1368_p9 = scmp.lt.u32.totalorder %s1361_s8, %s1957_s1 }
  0x30   : > { %p1364_p7 = pnand %p1362_p3, %p1335_p6 }
  0x32   : > { %p1365_p8 = pneg %p1364_p7 }
  0x34   : > { %p1370_p11 = pnand %p1368_p9, %p1365_p8 }
  0x36   : > { %1373 = shalt.err (!%p1370_p11)
}
  0x37   : > { %s1374_s27 = scalar_lea.vmem %s1626_s30, 64  ;;  %p1382_p4 = scmp.lt.s32.totalorder %s1626_s30, %s1626_s30 }
  0x38   : > { %p1375_p5 = scmp.ne.s32.totalorder %s1626_s30, %s1374_s27  ;;  %p1383_p10 = scmp.lt.s32.totalorder %s1374_s27, %s1374_s27 }
  0x3a   : > { %p1377_p13 = pnand %p1375_p5, %p1335_p6  ;;  %p1384_p3 = por %p1383_p10, %p1382_p4 }
  0x3c   : > { %p1378_p0 = pneg %p1377_p13 }
  0x3e   : > { %p1385_p7 = pnand %p1384_p3, %p1378_p0 }
  0x40   : > { %1388 = shalt.err (!%p1385_p7)
}
  0x41   : > { %1156 = dma.hbm_to_vmem [thread:$0]  (!%p1616_p1), %s1957_s1, 64, %s1626_s30, [#allocation7]  }
  0x42   : > { %s27_s29 = sadd.s32 1, %s1505_s16  ;;  %s177_s5 = sand.u32 1, %s1509_s17  }
  0x43   : > { %p28_p6 = scmp.ge.s32.totalorder %s27_s29, 4  ;;  %s179_s6 = sand.u32 1, %s1497_s14  }
  0x44   : > { %s1124_s7 = sshll.u32 %s1505_s16, 7  ;;  %s1042_s28 = sshll.u32 %s179_s6, 9 }
  0x45   : > { %s1983_s29 = smov (%p28_p6, %s27_s29), 0  ;;  %s1689_s10 = scalar_lea.hbm %s1958_s2, %s1124_s7 }
  0x46   : > { %s81_s30 = ssub.s32 %s1505_s16, %s1983_s29  ;;  %s181_s11 = scalar_lea.vmem [#allocation8], %s1042_s28 }
  0x47   : > { %p82_p1 = scmp.eq.s32.totalorder %s81_s30, 0  ;;  %s188_s19 = sshll.u32 %s181_s11, 4  ;;  %s1693_s19 = int_to_ptr.vmem [resolvable:$true] %s188_s19 }
  0x48   : > { %s1700_s21 = scalar_lea.sflag [#allocation4], %s177_s5  ;;  %s1389_s26 = scalar_lea.hbm %s1689_s10, 8192 }
  0x49   : > { %s1698_s27 = scalar_select %p82_p1, %s1497_s14, %s84_s20  }
  0x4a   : > { %p1390_p8 = scmp.ne.s32.totalorder %s1689_s10, %s1389_s26  ;;  %p1391_p9 = pneg %p1622_p2 }
  0x4b   : > { %s1394_s28 = scalar_lea.hbm %s1958_s2, 32768  ;;  %p1395_p13 = scmp.lt.u32.totalorder %s1689_s10, %s1958_s2 }
  0x4c   : > { %p1392_p11 = pnand %p1391_p9, %p1390_p8  ;;  %p1396_p0 = scmp.lt.u32.totalorder %s1394_s28, %s1389_s26 }
  0x4d   : > { %p1398_p10 = scmp.lt.u32.totalorder %s1389_s26, %s1689_s10 }
  0x4e   : > { %p1393_p5 = pneg %p1392_p11  ;;  %p1397_p4 = por %p1396_p0, %p1395_p13 }
  0x50   : > { %p1399_p3 = por %p1398_p10, %p1397_p4 }
  0x52   : > { %p1400_p7 = pnand %p1399_p3, %p1393_p5 }
  0x54   : > { %1403 = shalt.err (!%p1400_p7)
}
  0x55   : > { %s1404_s20 = scalar_lea.vmem %s1693_s19, 8192  ;;  %s1515_s5 = smov [#allocation8]  }
  0x56   : > { %p1405_p6 = scmp.ne.s32.totalorder %s1693_s19, %s1404_s20  ;;  %s1409_s30 = sshll.u32 %s1515_s5, 4  ;;  %s1410_s30 = int_to_ptr.vmem [resolvable:$false] %s1409_s30 }
  0x57   : > { %s1411_s11 = scalar_lea.vmem %s1410_s30, 16384  ;;  %p1412_p11 = scmp.lt.s32.totalorder %s1693_s19, %s1410_s30 }
  0x58   : > { %p1407_p1 = pnand %p1405_p6, %p1391_p9  ;;  %p1413_p13 = scmp.lt.s32.totalorder %s1411_s11, %s1404_s20 }
  0x5a   : > { %p1408_p8 = pneg %p1407_p1  ;;  %p1414_p0 = por %p1413_p13, %p1412_p11 }
  0x5c   : > { %p1415_p4 = pnand %p1414_p0, %p1408_p8 }
  0x5e   : > { %1418 = shalt.err (!%p1415_p4)
}
  0x5f   : > { %s1516_s26 = smov 512   ;;  %s1517_s6 = smov 128  }
  0x60   : > { %s1518_s7 = smov 8   ;;  %200 = sbr.rel (%p1605_p12) target bundleno = 606 (0x25e), region = 32 }
  0x61   : > { %1160 = dma.hbm_to_vmem [thread:$0]  (!%p1622_p2), %s1689_s10, 8192, %s1693_s19, %s1700_s21, %s1516_s26, %s1517_s6, %s1518_s7  }
  0x62   : > { %p1970_p9 = scmp.eq.s32.totalorder (!%p1605_p12), %s1574_s18, 0 }
  0x67   : > { %1472 = dma.done.wait (%p1970_p9), [#allocation4], 1024   ;;  %p1971_p5 = pmov %p1970_p9 }
  0x69   : > { %1474 = vsyncadd (%p1971_p5), [#allocation4], 4294966272  ;;  %p1972_p10 = pmov %p1971_p5 }
  0x6a   : > { %p1973_p3 = pmov %p1971_p5 }
  0x6b   : > { %1476 = dma.done.wait (%p1972_p10), [#allocation7], 64  }
  0x6c   : > { %1478 = vsyncadd (%p1973_p3), [#allocation7], 4294967232  ;;  %s210_s4 = sand.u32 1, %s1574_s18   ;;  %s1740_s10 = sand.u32 1, %s1493_s13  }
  0x6d   : > { %s1048_s25 = sshll.u32 %s1740_s10, 9  ;;  %s211_s19 = scalar_lea.sflag [#allocation4], %s210_s4 }
  0x6e   : > { %s1743_s21 = scalar_lea.vmem [#allocation8], %s1048_s25  ;;  %p1974_p12 = scmp.ne.s32.totalorder %s1964_s22, 0 }
  0x70   : > { %1480 = dma.done.wait (%p1974_p12), %s211_s19, 8192  }
  0x71   : > { %1482 = vsyncadd (%p1974_p12), %s211_s19, 4294959104  ;;  %s1049_s28 = sshll.u32 %s1740_s10, 5  ;;  %p1050_p2 = scmp.ne.s32.totalorder %s1501_s15, 0 }
  0x72   : > { %s1750_s8 = scalar_lea.vmem [#allocation9], %s1049_s28  ;;  %v249_v0 = vld [vmem:[#allocation3 + $0x20] sm:$0xff] (!%p1050_p2)  ;;  %v250_v1 = vld [vmem:[#allocation3 + $0x28] sm:$0xff] (!%p1050_p2)  ;;  %v251_v12 = vld [vmem:[#allocation3 + $0x30] sm:$0xff] (!%p1050_p2)  ;;  %v336_v55 = vlaneseq (!%p1050_p2) }
  0x73   : > { %244 = sbr.rel (%p1050_p2) target bundleno = 297 (0x129), region = 48  ;;  %v245_v2 = vld [vmem:[#allocation3] sm:$0xff] (!%p1050_p2)  ;;  %v1753_v3 = vunpack.c.l.bf16 (!%p1050_p2), %v249_v0  ;;  %v1755_v4 = vunpack.c.h.bf16 (!%p1050_p2), %v249_v0  ;;  %v1757_v5 = vunpack.c.l.bf16 (!%p1050_p2), %v250_v1  ;;  %v1759_v6 = vunpack.c.h.bf16 (!%p1050_p2), %v250_v1  ;;  %v246_v7 = vld [vmem:[#allocation3 + $0x8] sm:$0xff] (!%p1050_p2)  ;;  %v252_v13 = vld [vmem:[#allocation3 + $0x38] sm:$0xff] (!%p1050_p2) }
  0x74   : > { %v1761_v8 = vunpack.c.l.bf16 (!%p1050_p2), %v245_v2  ;;  %v1763_v9 = vunpack.c.h.bf16 (!%p1050_p2), %v245_v2  ;;  %v1765_v10 = vunpack.c.l.bf16 (!%p1050_p2), %v246_v7  ;;  %v1767_v11 = vunpack.c.h.bf16 (!%p1050_p2), %v246_v7  ;;  %v247_v18 = vld [vmem:[#allocation3 + $0x10] sm:$0xff] (!%p1050_p2)  ;;  %v248_v27 = vld [vmem:[#allocation3 + $0x18] sm:$0xff] (!%p1050_p2) }
  0x75   : > { %v277_v14 = vmul.f32 (!%p1050_p2), %v1753_v3, %v1753_v3  ;;  %v278_v15 = vmul.f32 (!%p1050_p2), %v1755_v4, %v1755_v4  ;;  %v279_v16 = vmul.f32 (!%p1050_p2), %v1757_v5, %v1757_v5  ;;  %v280_v17 = vmul.f32 (!%p1050_p2), %v1759_v6, %v1759_v6 }
  0x76   : > { %v269_v19 = vmul.f32 (!%p1050_p2), %v1761_v8, %v1761_v8  ;;  %v270_v20 = vmul.f32 (!%p1050_p2), %v1763_v9, %v1763_v9  ;;  %v271_v21 = vmul.f32 (!%p1050_p2), %v1765_v10, %v1765_v10  ;;  %v272_v22 = vmul.f32 (!%p1050_p2), %v1767_v11, %v1767_v11 }
  0x77   : > { %v295_v23 = vadd.f32 (!%p1050_p2), %v278_v15, %v277_v14  ;;  %v1785_v24 = vunpack.c.l.bf16 (!%p1050_p2), %v251_v12  ;;  %v1787_v25 = vunpack.c.h.bf16 (!%p1050_p2), %v251_v12  ;;  %v1789_v26 = vunpack.c.l.bf16 (!%p1050_p2), %v252_v13  ;;  %v334_v14 = vld [vmem:[#allocation6] sm:$0xf] (!%p1050_p2) }
  0x78   : > { %v285_v28 = vadd.f32 (!%p1050_p2), %v270_v20, %v269_v19  ;;  %v1791_v29 = vunpack.c.h.bf16 (!%p1050_p2), %v252_v13  ;;  %v1793_v30 = vunpack.c.l.bf16 (!%p1050_p2), %v247_v18  ;;  %v1795_v31 = vunpack.c.h.bf16 (!%p1050_p2), %v247_v18 }
  0x79   : > { %v296_v32 = vadd.f32 (!%p1050_p2), %v295_v23, %v279_v16  ;;  %v281_v33 = vmul.f32 (!%p1050_p2), %v1785_v24, %v1785_v24  ;;  %v282_v34 = vmul.f32 (!%p1050_p2), %v1787_v25, %v1787_v25  ;;  %v283_v35 = vmul.f32 (!%p1050_p2), %v1789_v26, %v1789_v26 }
  0x7a   : > { %v286_v36 = vadd.f32 %v285_v28, %v271_v21  ;;  %v284_v37 = vmul.f32 %v1791_v29, %v1791_v29  ;;  %v1805_v38 = vunpack.c.l.bf16 %v248_v27  ;;  %v1807_v39 = vunpack.c.h.bf16 %v248_v27 }
  0x7b   : > { %v297_v40 = vadd.f32 %v296_v32, %v280_v17  ;;  %v300_v41 = vadd.f32 %v282_v34, %v281_v33  ;;  %v273_v42 = vmul.f32 %v1793_v30, %v1793_v30  ;;  %v274_v43 = vmul.f32 %v1795_v31, %v1795_v31 }
  0x7c   : > { %v287_v44 = vadd.f32 %v286_v36, %v272_v22  ;;  %v275_v45 = vmul.f32 %v1805_v38, %v1805_v38  ;;  %v276_v47 = vmul.f32 %v1807_v39, %v1807_v39  ;;  %v337_v61 = vshrl.u32 %v336_v55, 7 }
  0x7d   : > { %298 = vadd.xlane.f32.xlu1 %v297_v40  ;;  %v301_v46 = vadd.f32 %v300_v41, %v283_v35  ;;  %v290_v48 = vadd.f32 %v274_v43, %v273_v42 }
  0x7e   : > { %288 = vadd.xlane.f32.xlu0 %v287_v44  ;;  %v338_v2 = vsub.s32 0, %v337_v61  ;;  %v342_v7 = vsub.s32 1, %v337_v61  ;;  %v346_v12 = vsub.s32 2, %v337_v61  ;;  %v350_v13 = vsub.s32 3, %v337_v61 }
  0x7f   : > { %v302_v49 = vadd.f32 %v301_v46, %v284_v37  ;;  %v291_v50 = vadd.f32 %v290_v48, %v275_v45 }
  0x80   : > { %v339_v16 = vrot.slane %v334_v14, %v338_v2  ;;  %v343_v17 = vrot.slane %v334_v14, %v342_v7  ;;  %v347_v18 = vrot.slane %v334_v14, %v346_v12  ;;  %v351_v19 = vrot.slane %v334_v14, %v350_v13 }
  0x81   : > { %303 = vadd.xlane.f32.xlu1 %v302_v49  ;;  %v292_v51 = vadd.f32 %v291_v50, %v276_v47 }
  0x83   : > { %293 = vadd.xlane.f32.xlu0 %v292_v51 }
 0x10a   : > { %v299_v52 = vpop.xlane.xlu1 %298 }
 0x10b   : > { %v308_v53 = vmul.f32 0.001953125, %v299_v52  ;;  %v289_v54 = vpop.xlane.xlu0 %288 }
 0x10c   : > { %v306_v56 = vmul.f32 0.001953125, %v289_v54 }
 0x10d   : > { %v312_v57 = vadd.f32 1e-05, %v308_v53 }
 0x10e   : > { %v310_v58 = vadd.f32 1e-05, %v306_v56  ;;  %v304_v59 = vpop.xlane.xlu1 %303 }
 0x10f   : > { %1229 = vrsqrt.f32 %v312_v57  ;;  %v309_v60 = vmul.f32 0.001953125, %v304_v59 }
 0x110   : > { %1231 = vrsqrt.f32 %v310_v58  ;;  %v294_v62 = vpop.xlane.xlu0 %293 }
 0x111   : > { %v313_v63 = vadd.f32 1e-05, %v309_v60  ;;  %v307_v0 = vmul.f32 0.001953125, %v294_v62 }
 0x113   : > { %1233 = vrsqrt.f32 %v313_v63  ;;  %v311_v1 = vadd.f32 1e-05, %v307_v0 }
 0x115   : > { %1235 = vrsqrt.f32 %v311_v1 }
 0x119   : > { %v1230_v15 = vpop.eup %1229 }
 0x11a   : > { %v1232_v20 = vpop.eup %1231  ;;  %v326_v21 = vmul.f32 %v1230_v15, %v1753_v3  ;;  %v327_v22 = vmul.f32 %v1230_v15, %v1755_v4  ;;  %v328_v23 = vmul.f32 %v1230_v15, %v1757_v5  ;;  %v329_v27 = vmul.f32 %v1230_v15, %v1759_v6 }
 0x11b   : > { %v318_v28 = vmul.f32 %v1232_v20, %v1761_v8  ;;  %v319_v32 = vmul.f32 %v1232_v20, %v1763_v9  ;;  %v320_v33 = vmul.f32 %v1232_v20, %v1765_v10  ;;  %v321_v34 = vmul.f32 %v1232_v20, %v1767_v11 }
 0x11c   : > { %v364_v36 = vmul.f32 %v339_v16, %v326_v21  ;;  %v365_v37 = vmul.f32 %v343_v17, %v327_v22  ;;  %v366_v40 = vmul.f32 %v347_v18, %v328_v23  ;;  %v367_v41 = vmul.f32 %v351_v19, %v329_v27 }
 0x11d   : > { %v1234_v35 = vpop.eup %1233  ;;  %v356_v42 = vmul.f32 %v339_v16, %v318_v28  ;;  %v357_v9 = vmul.f32 %v343_v17, %v319_v32  ;;  %v358_v43 = vmul.f32 %v347_v18, %v320_v33  ;;  %v359_v10 = vmul.f32 %v351_v19, %v321_v34 }
 0x11e   : > { %v330_v3 = vmul.f32 %v1234_v35, %v1785_v24  ;;  %v331_v4 = vmul.f32 %v1234_v35, %v1787_v25  ;;  %v332_v5 = vmul.f32 %v1234_v35, %v1789_v26  ;;  %v333_v6 = vmul.f32 %v1234_v35, %v1791_v29 }
 0x11f   : > { %v1236_v8 = vpop.eup %1235 }
 0x120   : > { %v368_v44 = vmul.f32 %v339_v16, %v330_v3  ;;  %v369_v11 = vmul.f32 %v343_v17, %v331_v4  ;;  %v370_v45 = vmul.f32 %v347_v18, %v332_v5  ;;  %v371_v46 = vmul.f32 %v351_v19, %v333_v6 }
 0x121   : > { %v322_v47 = vmul.f32 %v1236_v8, %v1793_v30  ;;  %v323_v48 = vmul.f32 %v1236_v8, %v1795_v31  ;;  %v324_v24 = vmul.f32 %v1236_v8, %v1805_v38  ;;  %v325_v25 = vmul.f32 %v1236_v8, %v1807_v39 }
 0x122   : > { %v376_v26 = vpack.c.bf16 %v368_v44, %v364_v36  ;;  %v377_v49 = vpack.c.bf16 %v369_v11, %v365_v37  ;;  %v378_v29 = vpack.c.bf16 %v370_v45, %v366_v40  ;;  %v379_v50 = vpack.c.bf16 %v371_v46, %v367_v41 }
 0x123   : > { %v360_v51 = vmul.f32 %v339_v16, %v322_v47  ;;  %v361_v52 = vmul.f32 %v343_v17, %v323_v48  ;;  %v362_v53 = vmul.f32 %v347_v18, %v324_v24  ;;  %v363_v54 = vmul.f32 %v351_v19, %v325_v25 }
 0x124   : > { %384 = vst [vmem:[#allocation2 + $0x20] sm:$0xff] %v376_v26  ;;  %385 = vst [vmem:[#allocation2 + $0x28] sm:$0xff] %v377_v49 }
 0x125   : > { %386 = vst [vmem:[#allocation2 + $0x30] sm:$0xff] %v378_v29  ;;  %387 = vst [vmem:[#allocation2 + $0x38] sm:$0xff] %v379_v50  ;;  %v372_v55 = vpack.c.bf16 %v360_v51, %v356_v42  ;;  %v373_v30 = vpack.c.bf16 %v361_v52, %v357_v9  ;;  %v374_v56 = vpack.c.bf16 %v362_v53, %v358_v43 }
 0x126   : > { %v375_v31 = vpack.c.bf16 %v363_v54, %v359_v10 }
 0x127   : > { %380 = vst [vmem:[#allocation2] sm:$0xff] %v372_v55  ;;  %381 = vst [vmem:[#allocation2 + $0x8] sm:$0xff] %v373_v30 }
 0x128   : > { %382 = vst [vmem:[#allocation2 + $0x10] sm:$0xff] %v374_v56  ;;  %383 = vst [vmem:[#allocation2 + $0x18] sm:$0xff] %v375_v31 }
 0x129 PF: > { %v1237_v38 = vld [vmem:[%s1743_s21 + $0x4] ss:$8 sps:$4 sm:$0xff]   ;;  %v1241_v57 = vld [vmem:[%s1743_s21] ss:$8 sps:$4 sm:$0xff]   ;;  %v1243_v59 = vld [vmem:[%s1743_s21 + $0x14] ss:$8 sps:$4 sm:$0xff]  }
 0x12a   : > { %v1239_v39 = vld [vmem:[%s1743_s21 + $0x104] ss:$8 sps:$4 sm:$0xff]   ;;  %780 = vmatprep.subr.bf16.mxu1 %v1237_v38  ;;  %v1242_v58 = vld [vmem:[%s1743_s21 + $0x100] ss:$8 sps:$4 sm:$0xff]   ;;  %v1245_v60 = vld [vmem:[%s1743_s21 + $0x114] ss:$8 sps:$4 sm:$0xff]  }
 0x12b   : > { %833 = vmatprep.subr.bf16.mxu0 %v1239_v39  ;;  %781 = vmatpush1.bf16.msra.mxu1 %v1241_v57  ;;  %v1247_v61 = vld [vmem:[%s1743_s21 + $0x10] ss:$8 sps:$4 sm:$0xff]   ;;  %v1249_v63 = vld [vmem:[%s1743_s21 + $0x24] ss:$8 sps:$4 sm:$0xff]   ;;  %v1253_v1 = vld [vmem:[%s1743_s21 + $0x20] ss:$8 sps:$4 sm:$0xff]  }
 0x12c   : > { %834 = vmatpush1.bf16.msra.mxu0 %v1242_v58  ;;  %782 = vmatprep.subr.bf16.mxu1 %v1243_v59  ;;  %v1248_v62 = vld [vmem:[%s1743_s21 + $0x110] ss:$8 sps:$4 sm:$0xff]   ;;  %v1251_v0 = vld [vmem:[%s1743_s21 + $0x124] ss:$8 sps:$4 sm:$0xff]   ;;  %v1254_v2 = vld [vmem:[%s1743_s21 + $0x120] ss:$8 sps:$4 sm:$0xff]  }
 0x12d   : > { %835 = vmatprep.subr.bf16.mxu0 %v1245_v60  ;;  %v1255_v7 = vld [vmem:[%s1743_s21 + $0x34] ss:$8 sps:$4 sm:$0xff]   ;;  %v1259_v13 = vld [vmem:[%s1743_s21 + $0x30] ss:$8 sps:$4 sm:$0xff]   ;;  %v1261_v15 = vld [vmem:[%s1743_s21 + $0x44] ss:$8 sps:$4 sm:$0xff]  }
 0x12e   : > { %v1257_v12 = vld [vmem:[%s1743_s21 + $0x134] ss:$8 sps:$4 sm:$0xff]   ;;  %v1260_v14 = vld [vmem:[%s1743_s21 + $0x130] ss:$8 sps:$4 sm:$0xff]   ;;  %v1263_v16 = vld [vmem:[%s1743_s21 + $0x144] ss:$8 sps:$4 sm:$0xff]  }
 0x12f   : > { %783 = vmatpush1.bf16.msra.mxu1 %v1247_v61  ;;  %v1265_v17 = vld [vmem:[%s1743_s21 + $0x40] ss:$8 sps:$4 sm:$0xff]   ;;  %v1267_v19 = vld [vmem:[%s1743_s21 + $0x54] ss:$8 sps:$4 sm:$0xff]   ;;  %v1271_v21 = vld [vmem:[%s1743_s21 + $0x50] ss:$8 sps:$4 sm:$0xff]  }
 0x130   : > { %836 = vmatpush1.bf16.msra.mxu0 %v1248_v62  ;;  %784 = vmatprep.subr.bf16.mxu1 %v1249_v63  ;;  %v1266_v18 = vld [vmem:[%s1743_s21 + $0x140] ss:$8 sps:$4 sm:$0xff]   ;;  %v1269_v20 = vld [vmem:[%s1743_s21 + $0x154] ss:$8 sps:$4 sm:$0xff]   ;;  %v1272_v22 = vld [vmem:[%s1743_s21 + $0x150] ss:$8 sps:$4 sm:$0xff]  }
 0x131   : > { %837 = vmatprep.subr.bf16.mxu0 %v1251_v0  ;;  %v1273_v23 = vld [vmem:[%s1743_s21 + $0x64] ss:$8 sps:$4 sm:$0xff]   ;;  %v1277_v28 = vld [vmem:[%s1743_s21 + $0x60] ss:$8 sps:$4 sm:$0xff]   ;;  %v1279_v33 = vld [vmem:[%s1743_s21 + $0x74] ss:$8 sps:$4 sm:$0xff]  }
 0x132   : > { %v1275_v27 = vld [vmem:[%s1743_s21 + $0x164] ss:$8 sps:$4 sm:$0xff]   ;;  %v1278_v32 = vld [vmem:[%s1743_s21 + $0x160] ss:$8 sps:$4 sm:$0xff]   ;;  %v1281_v34 = vld [vmem:[%s1743_s21 + $0x174] ss:$8 sps:$4 sm:$0xff]  }
 0x133   : > { %785 = vmatpush1.bf16.msra.mxu1 %v1253_v1  ;;  %v1283_v35 = vld [vmem:[%s1743_s21 + $0x70] ss:$8 sps:$4 sm:$0xff]   ;;  %v1285_v37 = vld [vmem:[%s1743_s21 + $0x84] ss:$8 sps:$4 sm:$0xff]   ;;  %v1289_v41 = vld [vmem:[%s1743_s21 + $0x80] ss:$8 sps:$4 sm:$0xff]  }
 0x134   : > { %838 = vmatpush1.bf16.msra.mxu0 %v1254_v2  ;;  %786 = vmatprep.subr.bf16.mxu1 %v1255_v7  ;;  %v1284_v36 = vld [vmem:[%s1743_s21 + $0x170] ss:$8 sps:$4 sm:$0xff]   ;;  %v1287_v40 = vld [vmem:[%s1743_s21 + $0x184] ss:$8 sps:$4 sm:$0xff]   ;;  %v1290_v3 = vld [vmem:[%s1743_s21 + $0x180] ss:$8 sps:$4 sm:$0xff]  }
 0x135   : > { %839 = vmatprep.subr.bf16.mxu0 %v1257_v12  ;;  %v1291_v4 = vld [vmem:[%s1743_s21 + $0x94] ss:$8 sps:$4 sm:$0xff]   ;;  %v1295_v6 = vld [vmem:[%s1743_s21 + $0x90] ss:$8 sps:$4 sm:$0xff]   ;;  %v1297_v42 = vld [vmem:[%s1743_s21 + $0xa4] ss:$8 sps:$4 sm:$0xff]  }
 0x136   : > { %v1293_v5 = vld [vmem:[%s1743_s21 + $0x194] ss:$8 sps:$4 sm:$0xff]   ;;  %v1296_v8 = vld [vmem:[%s1743_s21 + $0x190] ss:$8 sps:$4 sm:$0xff]   ;;  %v1299_v9 = vld [vmem:[%s1743_s21 + $0x1a4] ss:$8 sps:$4 sm:$0xff]  }
 0x137   : > { %787 = vmatpush1.bf16.msra.mxu1 %v1259_v13  ;;  %v1301_v43 = vld [vmem:[%s1743_s21 + $0xa0] ss:$8 sps:$4 sm:$0xff]   ;;  %v1303_v44 = vld [vmem:[%s1743_s21 + $0xb4] ss:$8 sps:$4 sm:$0xff]   ;;  %v1307_v47 = vld [vmem:[%s1743_s21 + $0xb0] ss:$8 sps:$4 sm:$0xff]  }
 0x138   : > { %840 = vmatpush1.bf16.msra.mxu0 %v1260_v14  ;;  %788 = vmatprep.subr.bf16.mxu1 %v1261_v15  ;;  %v1302_v10 = vld [vmem:[%s1743_s21 + $0x1a0] ss:$8 sps:$4 sm:$0xff]   ;;  %v1305_v11 = vld [vmem:[%s1743_s21 + $0x1b4] ss:$8 sps:$4 sm:$0xff]   ;;  %v1308_v48 = vld [vmem:[%s1743_s21 + $0x1b0] ss:$8 sps:$4 sm:$0xff]  }
 0x139   : > { %841 = vmatprep.subr.bf16.mxu0 %v1263_v16  ;;  %v389_v45 = vld [vmem:[#allocation2 + $0x8] sm:$0xff]  ;;  %v391_v46 = vld [vmem:[#allocation2 + $0x18] sm:$0xff]  ;;  %v388_v57 = vld [vmem:[#allocation2] sm:$0xff]  ;;  %s1129_s18 = sshll.u32 %s1501_s15, 7  ;;  %s931_s22 = sshll.u32 %s1750_s8, 4  ;;  %s1906_s22 = int_to_ptr.vmem [resolvable:$true] %s931_s22 }
 0x13a   : > { %812 = vmatprep.mubr.bf16.mxu1 %v389_v45  ;;  %v1309_v24 = vld [vmem:[%s1743_s21 + $0xc4] ss:$8 sps:$4 sm:$0xff]   ;;  %865 = vmatprep.mubr.bf16.mxu0 %v391_v46  ;;  %v1313_v26 = vld [vmem:[%s1743_s21 + $0xc0] ss:$8 sps:$4 sm:$0xff]   ;;  %v1315_v29 = vld [vmem:[%s1743_s21 + $0xd4] ss:$8 sps:$4 sm:$0xff]   ;;  %s1904_s5 = scalar_lea.hbm %s1959_s3, %s1129_s18 }
 0x13b   : > { %789 = vmatpush1.bf16.msra.mxu1 %v1265_v17  ;;  %v1311_v25 = vld [vmem:[%s1743_s21 + $0x1c4] ss:$8 sps:$4 sm:$0xff]   ;;  %v1314_v49 = vld [vmem:[%s1743_s21 + $0x1c0] ss:$8 sps:$4 sm:$0xff]   ;;  %v1317_v50 = vld [vmem:[%s1743_s21 + $0x1d4] ss:$8 sps:$4 sm:$0xff]  }
 0x13c   : > { %842 = vmatpush1.bf16.msra.mxu0 %v1266_v18  ;;  %790 = vmatprep.subr.bf16.mxu1 %v1267_v19  ;;  %v1319_v51 = vld [vmem:[%s1743_s21 + $0xd0] ss:$8 sps:$4 sm:$0xff]   ;;  %v1321_v53 = vld [vmem:[%s1743_s21 + $0xe4] ss:$8 sps:$4 sm:$0xff]   ;;  %v1325_v55 = vld [vmem:[%s1743_s21 + $0xe0] ss:$8 sps:$4 sm:$0xff]  }
 0x13d   : > { %843 = vmatprep.subr.bf16.mxu0 %v1269_v20  ;;  %v1320_v52 = vld [vmem:[%s1743_s21 + $0x1d0] ss:$8 sps:$4 sm:$0xff]   ;;  %v1323_v54 = vld [vmem:[%s1743_s21 + $0x1e4] ss:$8 sps:$4 sm:$0xff]   ;;  %v1326_v30 = vld [vmem:[%s1743_s21 + $0x1e0] ss:$8 sps:$4 sm:$0xff]  }
 0x13e   : > { %v1327_v56 = vld [vmem:[%s1743_s21 + $0xf4] ss:$8 sps:$4 sm:$0xff]   ;;  %v1331_v38 = vld [vmem:[%s1743_s21 + $0xf0] ss:$8 sps:$4 sm:$0xff]   ;;  %v393_v59 = vld [vmem:[#allocation2 + $0x28] sm:$0xff]  ;;  %s915_s15 = scalar_lea.sflag [#allocation5], %s1740_s10 }
 0x13f   : > { %791 = vmatpush1.bf16.msra.mxu1 %v1271_v21  ;;  %v1329_v31 = vld [vmem:[%s1743_s21 + $0x1f4] ss:$8 sps:$4 sm:$0xff]   ;;  %v1332_v39 = vld [vmem:[%s1743_s21 + $0x1f0] ss:$8 sps:$4 sm:$0xff]   ;;  %s1419_s30 = scalar_lea.vmem %s1906_s22, 512  ;;  %p1975_p6 = scmp.ne.s32.totalorder %s1965_s23, 0 }
 0x140   : > { %844 = vmatpush1.bf16.msra.mxu0 %v1272_v22  ;;  %792 = vmatprep.subr.bf16.mxu1 %v1273_v23  ;;  %v390_v58 = vld [vmem:[#allocation2 + $0x10] sm:$0xff]  ;;  %v395_v60 = vld [vmem:[#allocation2 + $0x38] sm:$0xff]  ;;  %v392_v61 = vld [vmem:[#allocation2 + $0x20] sm:$0xff]  ;;  %p1420_p7 = scmp.ne.s32.totalorder %s1906_s22, %s1419_s30  ;;  %s1519_s11 = smov [#allocation9]  }
 0x141   : > { %845 = vmatprep.subr.bf16.mxu0 %v1275_v27  ;;  %v394_v62 = vld [vmem:[#allocation2 + $0x30] sm:$0xff]  ;;  %s1423_s26 = sshll.u32 %s1519_s11, 4  ;;  %s1424_s26 = int_to_ptr.vmem [resolvable:$false] %s1423_s26 }
 0x142   : > { %p1421_p1 = pnand %p1420_p7, %p1975_p6  ;;  %s1425_s6 = scalar_lea.vmem %s1424_s26, 1024 }
 0x143   : > { %793 = vmatpush1.bf16.msra.mxu1 %v1277_v28  ;;  %p1426_p11 = scmp.lt.s32.totalorder %s1906_s22, %s1424_s26  ;;  %p1427_p13 = scmp.lt.s32.totalorder %s1425_s6, %s1419_s30 }
 0x144   : > { %846 = vmatpush1.bf16.msra.mxu0 %v1278_v32  ;;  %794 = vmatprep.subr.bf16.mxu1 %v1279_v33  ;;  %p1422_p8 = pneg %p1421_p1 }
 0x145   : > { %847 = vmatprep.subr.bf16.mxu0 %v1281_v34  ;;  %p1428_p0 = por %p1427_p13, %p1426_p11 }
 0x147   : > { %795 = vmatpush1.bf16.msra.mxu1 %v1283_v35  ;;  %p1429_p4 = pnand %p1428_p0, %p1422_p8 }
 0x148   : > { %848 = vmatpush1.bf16.msra.mxu0 %v1284_v36  ;;  %796 = vmatprep.subr.bf16.mxu1 %v1285_v37 }
 0x149   : > { %849 = vmatprep.subr.bf16.mxu0 %v1287_v40 }
 0x14b   : > { %797 = vmatpush1.bf16.msra.mxu1 %v1289_v41 }
 0x14c   : > { %850 = vmatpush1.bf16.msra.mxu0 %v1290_v3  ;;  %798 = vmatprep.subr.bf16.mxu1 %v1291_v4 }
 0x14d   : > { %851 = vmatprep.subr.bf16.mxu0 %v1293_v5 }
 0x14f   : > { %799 = vmatpush1.bf16.msra.mxu1 %v1295_v6 }
 0x150   : > { %852 = vmatpush1.bf16.msra.mxu0 %v1296_v8  ;;  %800 = vmatprep.subr.bf16.mxu1 %v1297_v42 }
 0x151   : > { %853 = vmatprep.subr.bf16.mxu0 %v1299_v9 }
 0x153   : > { %801 = vmatpush1.bf16.msra.mxu1 %v1301_v43 }
 0x154   : > { %854 = vmatpush1.bf16.msra.mxu0 %v1302_v10  ;;  %802 = vmatprep.subr.bf16.mxu1 %v1303_v44 }
 0x155   : > { %855 = vmatprep.subr.bf16.mxu0 %v1305_v11 }
 0x157   : > { %803 = vmatpush1.bf16.msra.mxu1 %v1307_v47 }
 0x158   : > { %856 = vmatpush1.bf16.msra.mxu0 %v1308_v48  ;;  %804 = vmatprep.subr.bf16.mxu1 %v1309_v24 }
 0x159   : > { %857 = vmatprep.subr.bf16.mxu0 %v1311_v25 }
 0x15b   : > { %805 = vmatpush1.bf16.msra.mxu1 %v1313_v26 }
 0x15c   : > { %858 = vmatpush1.bf16.msra.mxu0 %v1314_v49  ;;  %806 = vmatprep.subr.bf16.mxu1 %v1315_v29 }
 0x15d   : > { %859 = vmatprep.subr.bf16.mxu0 %v1317_v50 }
 0x15f   : > { %807 = vmatpush1.bf16.msra.mxu1 %v1319_v51 }
 0x160   : > { %860 = vmatpush1.bf16.msra.mxu0 %v1320_v52  ;;  %808 = vmatprep.subr.bf16.mxu1 %v1321_v53 }
 0x161   : > { %861 = vmatprep.subr.bf16.mxu0 %v1323_v54 }
 0x163   : > { %809 = vmatpush1.bf16.msra.mxu1 %v1325_v55 }
 0x164   : > { %862 = vmatpush1.bf16.msra.mxu0 %v1326_v30  ;;  %810 = vmatprep.subr.bf16.mxu1 %v1327_v56 }
 0x165   : > { %863 = vmatprep.subr.bf16.mxu0 %v1329_v31 }
 0x167   : > { %811 = vmatpush1.bf16.msra.mxu1 %v1331_v38 }
 0x168   : > { %864 = vmatpush1.bf16.msra.mxu0 %v1332_v39 }
 0x16a   : > { %813 = vmatmul.mubr.bf16.vlgmr.msra.gmra.mrb[0].mxu1 %v388_v57 }
 0x16b   : > { %866 = vmatmul.mubr.bf16.vlgmr.msra.gmra.mrb[0].mxu0 %v390_v58  ;;  %822 = vmatprep.mubr.bf16.mxu1 %v393_v59 }
 0x16c   : > { %875 = vmatprep.mubr.bf16.mxu0 %v395_v60 }
 0x172   : > { %823 = vmatmul.mubr.bf16.gmra.mrb[4].mxu1 %v392_v61 }
 0x173   : > { %876 = vmatmul.mubr.bf16.gmra.mrb[4].mxu0 %v394_v62 }
 0x23d   : > { %v814_v63 = vpop.f32.mrb[0].mxu1 }
 0x23e   : > { %v867_v0 = vpop.f32.mrb[0].mxu0  ;;  %v816_v2 = vpop.f32.mrb[1].mxu1 }
 0x23f   : > { %v868_v1 = vadd.f32 %v867_v0, %v814_v63  ;;  %v869_v7 = vpop.f32.mrb[1].mxu0  ;;  %v818_v13 = vpop.f32.mrb[2].mxu1 }
 0x240   : > { %v870_v12 = vadd.f32 %v869_v7, %v816_v2  ;;  %v871_v14 = vpop.f32.mrb[2].mxu0  ;;  %v820_v16 = vpop.f32.mrb[3].mxu1 }
 0x241   : > { %v872_v15 = vadd.f32 %v871_v14, %v818_v13  ;;  %v873_v17 = vpop.f32.mrb[3].mxu0 }
 0x242   : > { %v1125_v18 = vpack.c.bf16 %v870_v12, %v868_v1  ;;  %v874_v19 = vadd.f32 %v873_v17, %v820_v16 }
 0x244   : > { %910 = vst [vmem:[%s1750_s8] sm:$0xff] %v1125_v18  ;;  %v1126_v20 = vpack.c.bf16 %v874_v19, %v872_v15 }
 0x245   : > { %v824_v21 = vpop.f32.mrb[4].mxu1 }
 0x246   : > { %911 = vst [vmem:[%s1750_s8 + $0x8] sm:$0xff] %v1126_v20  ;;  %v877_v22 = vpop.f32.mrb[4].mxu0  ;;  %v826_v27 = vpop.f32.mrb[5].mxu1 }
 0x247   : > { %v878_v23 = vadd.f32 %v877_v22, %v824_v21  ;;  %v879_v28 = vpop.f32.mrb[5].mxu0  ;;  %v828_v33 = vpop.f32.mrb[6].mxu1 }
 0x248   : > { %v880_v32 = vadd.f32 %v879_v28, %v826_v27  ;;  %v881_v34 = vpop.f32.mrb[6].mxu0  ;;  %v830_v36 = vpop.f32.mrb[7].mxu1 }
 0x249   : > { %v882_v35 = vadd.f32 %v881_v34, %v828_v33  ;;  %v883_v37 = vpop.f32.mrb[7].mxu0 }
 0x24a   : > { %v1127_v40 = vpack.c.bf16 %v880_v32, %v878_v23  ;;  %v884_v41 = vadd.f32 %v883_v37, %v830_v36 }
 0x24c   : > { %912 = vst [vmem:[%s1750_s8 + $0x10] sm:$0xff] %v1127_v40  ;;  %v1128_v3 = vpack.c.bf16 %v884_v41, %v882_v35 }
 0x24e   : > { %913 = vst [vmem:[%s1750_s8 + $0x18] sm:$0xff] %v1128_v3 }
 0x24f   : > { %1432 = shalt.err (!%p1429_p4)
}
 0x250   : > { %s1433_s7 = scalar_lea.hbm %s1904_s5, 512  ;;  %s1437_s19 = scalar_lea.hbm %s1959_s3, 2048 }
 0x251   : > { %p1434_p9 = scmp.ne.s32.totalorder %s1904_s5, %s1433_s7  ;;  %p1438_p3 = scmp.lt.u32.totalorder %s1904_s5, %s1959_s3 }
 0x252   : > { %p1439_p12 = scmp.lt.u32.totalorder %s1437_s19, %s1433_s7  ;;  %p1441_p7 = scmp.lt.u32.totalorder %s1433_s7, %s1904_s5 }
 0x253   : > { %p1435_p5 = pnand %p1434_p9, %p1975_p6 }
 0x254   : > { %p1440_p2 = por %p1439_p12, %p1438_p3 }
 0x255   : > { %p1436_p10 = pneg %p1435_p5 }
 0x256   : > { %p1442_p1 = por %p1441_p7, %p1440_p2 }
 0x258   : > { %p1443_p8 = pnand %p1442_p1, %p1436_p10 }
 0x25a   : > { %1446 = shalt.err (!%p1443_p8)
}
 0x25b   : > { %s1520_s8 = smov 128   ;;  %s1521_s18 = smov 512  }
 0x25c   : > { %s1522_s9 = smov 8  }
 0x25d   : > { %1148 = dma.vmem_to_hbm [thread:$0]  (%p1975_p6), %s1906_s22, 512, %s1904_s5, %s915_s15, %s1520_s8, %s1521_s18, %s1522_s9  }
 0x25e PF: > { %p1170_p11 = scmp.ge.s32.totalorder %s1509_s17, 2  ;;  %s946_s20 = sand.u32 1, %s1489_s12  }
 0x25f   : > { %p1976_p13 = scmp.ne.s32.totalorder %s1966_s24, 0  ;;  %s947_s30 = scalar_lea.sflag [#allocation5], %s946_s20 }
 0x261   : > { %p1162_p0 = pnand %p1170_p11, %p1976_p13 }
 0x263   : > { %1484 = dma.done.wait (!%p1162_p0), %s947_s30, 512  }
 0x264   : > { %1486 = vsyncadd (!%p1162_p0), %s947_s30, 4294966784  ;;  %s18_s17 = sadd.s32 1, %s1509_s17   ;;  %s1977_s12 = smov %s1493_s13 }
 0x265   : > { %p15_p4 = scmp.ge.s32.totalorder %s18_s17, 6   ;;  %s1978_s13 = smov %s1497_s14 }
 0x266   : > { %s1979_s14 = smov %s1698_s27  ;;  %s1980_s15 = smov %s1505_s16 }
 0x267   : > { %s1981_s16 = smov %s1983_s29  ;;  %17 = sbr.rel (!%p15_p4) target bundleno = 6 (0x6), region = 89 }
 0x26e   :  { %952 = vsyncpa [#allocation4], 1 }
 0x26f   :  { %954 = vsyncpa [#allocation4 + $0x1], 1 }
 0x270   :  { %955 = vsyncpa [#allocation7], 1 }
 0x271   :  { %956 = vsyncpa [#allocation5], 1 }
 0x272   :  { %958 = vsyncpa [#allocation5 + $0x1], 1 }

</bundles_post_ra>
